<compile_context>
chip_gen: v6e
topology: v6e:2x2x1
jax: 0.10.0
libtpu: 0.0.40
codegen_flags: <defaults>
</compile_context>

<pallas_src>
import jax
import jax.numpy as jnp
from jax import lax
from jax.experimental import pallas as pl
from jax.experimental.pallas import tpu as pltpu


def _round_up(x, m):
    return ((x + m - 1) // m) * m


def _vmem_budget_bytes():
    """Generation-aware (working-set budget, vmem_limit_bytes)."""
    cap = None
    try:
        info = pltpu.get_tpu_info()
        cap = getattr(info, "vmem_capacity_bytes", None)
    except Exception:
        cap = None
    if not cap:
        cap = 64 * 1024 * 1024  # conservative default = v7x physical VMEM
    budget = min(int(cap * 0.55), 80 * 1024 * 1024)
    limit = min(int(cap * 0.75), 100 * 1024 * 1024)
    return budget, int(limit)


def _pick_tiles(B, C, D, x_item, w_item, o_item, budget_bytes):
    """Lane/sublane-aligned (tm, tn, tk) under a generation-aware VMEM budget.

    tm rounded to the packed sublane tile of the input dtype (8/16/32 rows),
    tn a multiple of 128 (lane-dense stores), tk a multiple of 128.  When the
    working set is too big we shrink tk first so MXU-facing tm/tn stay large.
    """
    sub_m = {1: 32, 2: 16}.get(x_item, 8)
    tm = min(512, _round_up(B, sub_m))
    # Small batch tiles => weight-stream bound: widen class tiles to amortize
    # per-grid-step overhead over bigger DMAs.
    if tm <= 64:
        tn_cap = 2048
    elif tm <= 128:
        tn_cap = 1024
    else:
        tn_cap = 512
    tn = min(tn_cap, _round_up(C, 128))
    tk = _round_up(D, 128)

    def est(tm_, tn_, tk_):
        ins = 2 * (tm_ * tk_ * x_item + tn_ * tk_ * w_item + tn_ * 4)  # dbl-buffered
        outs = 2 * tm_ * tn_ * o_item
        acc = tm_ * tn_ * 4
        return ins + outs + acc

    while est(tm, tn, tk) > budget_bytes and tk > 2048:
        tk = _round_up((tk + 1) // 2, 128)
    while est(tm, tn, tk) > budget_bytes and tn > 256:
        tn = _round_up(tn // 2, 128)
    while est(tm, tn, tk) > budget_bytes and tm > sub_m:
        tm = max(sub_m, _round_up(tm // 2, sub_m))
    while est(tm, tn, tk) > budget_bytes and tk > 128:
        tk = _round_up((tk + 1) // 2, 128)
    while est(tm, tn, tk) > budget_bytes and tn > 128:
        tn = _round_up(tn // 2, 128)
    return tm, tn, tk


def _linear_kernel(x_ref, w_ref, b_ref, o_ref, acc_ref):
    # x_ref: [tm, tk]  w_ref: [tn, tk]  b_ref: [1, tn]  o_ref: [tm, tn]
    # acc_ref: f32 [tm, tn] scratch, persists across the innermost k axis.
    k = pl.program_id(2)

    @pl.when(k == 0)
    def _init():
        acc_ref[...] = jnp.zeros_like(acc_ref)

    # Contract the shared (last) feature axis of x and W -> x @ W.T on the MXU,
    # accumulating in f32.  Weight stays in nn.Linear [C, D] layout.
    acc_ref[...] += lax.dot_general(
        x_ref[...], w_ref[...],
        dimension_numbers=(((1,), (1,)), ((), ())),
        preferred_element_type=jnp.float32,
    )

    @pl.when(k == pl.num_programs(2) - 1)
    def _finalize():
        o_ref[...] = (acc_ref[...] + b_ref[...].astype(jnp.float32)).astype(o_ref.dtype)


def linear_classifier_pallas(x, weight, bias=None, compute_dtype=None):
    """x: [..., D], weight: [C, D] (nn.Linear layout), bias: [C] -> [..., C]."""
    orig_shape = x.shape
    if x.ndim != 2:
        x = x.reshape(-1, orig_shape[-1])
    B, D = x.shape
    C, Dw = weight.shape
    assert Dw == D, f"feature mismatch: x has {D}, weight has {Dw}"
    out_dtype = x.dtype

    if bias is None:
        bias = jnp.zeros((C,), out_dtype)

    if compute_dtype is not None:
        # Optional reduced-precision streaming (e.g. bf16): halves the dominant
        # [C, D] HBM stream; accumulation and bias-add stay in f32.
        x = x.astype(compute_dtype)
        weight = weight.astype(compute_dtype)

    x_item = jnp.dtype(x.dtype).itemsize
    w_item = jnp.dtype(weight.dtype).itemsize
    o_item = jnp.dtype(out_dtype).itemsize

    budget, vmem_limit = _vmem_budget_bytes()
    tm, tn, tk = _pick_tiles(B, C, D, x_item, w_item, o_item, budget)

    # Contraction axis: a single full-width block when it fits (block dim ==
    # full array dim is always legal, so no pad copy); otherwise zero-pad D to
    # a multiple of tk so no garbage enters the K reduction.  Batch / class
    # dims are NOT padded: partial edge blocks only pollute output rows/cols
    # that are masked on store.
    if tk >= _round_up(D, 128):
        tk = D
        nk = 1
    else:
        Dpad = _round_up(D, tk)
        if Dpad != D:
            x = jnp.pad(x, ((0, 0), (0, Dpad - D)))
            weight = jnp.pad(weight, ((0, 0), (0, Dpad - D)))
        nk = Dpad // tk

    ni = pl.cdiv(B, tm)
    nj = pl.cdiv(C, tn)

    bias2d = bias.reshape(1, C)

    # Grid order by operand footprint: the operand keyed by the OUTER spatial
    # axis has a block index that is invariant over the inner axis, so (with a
    # single K block) it streams from HBM exactly once; the other operand is
    # re-streamed n_outer times.  Pick the order with less total traffic.
    x_bytes = B * D * x_item
    w_bytes = C * D * w_item
    class_outer = (w_bytes + nj * x_bytes) <= (x_bytes + ni * w_bytes)

    if class_outer:
        grid = (nj, ni, nk)
        x_map = lambda j, i, k: (i, k)
        w_map = lambda j, i, k: (j, k)
        b_map = lambda j, i, k: (0, j)
        o_map = lambda j, i, k: (i, j)
    else:
        grid = (ni, nj, nk)
        x_map = lambda i, j, k: (i, k)
        w_map = lambda i, j, k: (j, k)
        b_map = lambda i, j, k: (0, j)
        o_map = lambda i, j, k: (i, j)

    out = pl.pallas_call(
        _linear_kernel,
        out_shape=jax.ShapeDtypeStruct((B, C), out_dtype),
        grid=grid,
        in_specs=[
            pl.BlockSpec((tm, tk), x_map),   # activations
            pl.BlockSpec((tn, tk), w_map),   # weight rows (nn.Linear layout)
            pl.BlockSpec((1, tn), b_map),    # bias slice
        ],
        out_specs=pl.BlockSpec((tm, tn), o_map),
        scratch_shapes=[pltpu.VMEM((tm, tn), jnp.float32)],
        compiler_params=pltpu.CompilerParams(
            # Outer spatial axis is megacore-sharded; inner spatial axis and
            # the K reduction run serially per core (accumulator correctness).
            dimension_semantics=("parallel", "arbitrary", "arbitrary"),
            vmem_limit_bytes=vmem_limit,
        ),
    )(x, weight, bias2d)

    if len(orig_shape) != 2:
        out = out.reshape(orig_shape[:-1] + (C,))
    return out


def apply_class_mapping(weight, bias, class_mapping):
    """Fuse the post-hoc column gather into the classifier parameters:
    (x @ W.T + b)[:, m] == x @ W[m].T + b[m].
    Call this ONCE and cache the result across eval steps (the gather is a
    full weight-sized HBM pass you don't want on every forward)."""
    return weight[class_mapping], bias[class_mapping]


def linear_postprocessor_forward(samples, targets, weight, bias,
                                 class_mapping=None, compute_dtype=None):
    """Pallas equivalent of LinearPostprocessor.forward."""
    if class_mapping is not None:
        weight, bias = apply_class_mapping(weight, bias, class_mapping)
    preds = linear_classifier_pallas(samples, weight, bias, compute_dtype=compute_dtype)
    return {"preds": preds, "target": targets}


if __name__ == "__main__":
    key = jax.random.PRNGKey(0)
    k_x, k_w, k_b, k_t = jax.random.split(key, 4)

    B, D, C = 8, 32, 16                     # batch, embed dim, num classes
    samples = jax.random.normal(k_x, (B, D), dtype=jnp.float32)
    weight = jax.random.normal(k_w, (C, D), dtype=jnp.float32) * 0.05
    bias = jax.random.normal(k_b, (C,), dtype=jnp.float32) * 0.01
    targets = jax.random.randint(k_t, (B,), 0, C, dtype=jnp.int32)

    # deterministic class mapping (subset / permutation of classes)
    class_mapping = jnp.array([3, 1, 0, 7, 5, 2, 10, 12], dtype=jnp.int32)

    # --- with class_mapping (gather fused onto the weight/bias, done once) ---
    out = linear_postprocessor_forward(samples, targets, weight, bias, class_mapping)
    jax.block_until_ready(out["preds"])
    jax.block_until_ready(out["target"])

    ref = (samples @ weight.T + bias)[:, class_mapping]
    assert out["preds"].shape == (B, class_mapping.shape[0])
    assert jnp.allclose(out["preds"], ref, atol=1e-4, rtol=1e-4)
    assert jnp.array_equal(out["target"], targets)

    # --- without class_mapping ---
    out2 = linear_postprocessor_forward(samples, targets, weight, bias, None)
    jax.block_until_ready(out2["preds"])
    ref2 = samples @ weight.T + bias
    assert out2["preds"].shape == (B, C)
    assert jnp.allclose(out2["preds"], ref2, atol=1e-4, rtol=1e-4)

    print("KERNEL_OK")
</pallas_src>

<mosaic_0001>
module attributes {stable_mosaic.version = 11 : i64} {
  func.func @_linear_kernel(%arg0: i32, %arg1: i32, %arg2: i32, %arg3: memref<8x32xf32, #tpu.memory_space<vmem>>, %arg4: memref<128x32xf32, #tpu.memory_space<vmem>>, %arg5: memref<1x128xf32, #tpu.memory_space<vmem>>, %arg6: memref<8x128xf32, #tpu.memory_space<vmem>>, %arg7: memref<8x128xf32, #tpu.memory_space<vmem>>) attributes {dimension_semantics = [#tpu.dimension_semantics<parallel>, #tpu.dimension_semantics<arbitrary>, #tpu.dimension_semantics<arbitrary>], iteration_bounds = array<i64: 1, 1, 1>, scalar_prefetch = 0 : i64, scratch_operands = 1 : i64, tpu.core_type = #tpu.core_type<tc>, window_params = [{transform_indices = @transform_0, window_bounds = array<i64: 8, 32>}, {transform_indices = @transform_1, window_bounds = array<i64: 128, 32>}, {transform_indices = @transform_2, window_bounds = array<i64: 1, 128>}, {transform_indices = @transform_3, window_bounds = array<i64: 8, 128>}]} {
    %c0_i32 = arith.constant 0 : i32
    %0 = arith.cmpi eq, %arg2, %c0_i32 : i32
    %1 = arith.extui %0 : i1 to i32
    %c0_i32_0 = arith.constant 0 : i32
    %2 = arith.cmpi ne, %1, %c0_i32_0 : i32
    scf.if %2 {
      %cst_10 = arith.constant 0.000000e+00 : f32
      %12 = vector.broadcast %cst_10 : f32 to vector<8x128xf32>
      %c0_11 = arith.constant 0 : index
      %c0_12 = arith.constant 0 : index
      %13 = vector.load %arg7[%c0_11, %c0_12] : memref<8x128xf32, #tpu.memory_space<vmem>>, vector<8x128xf32>
      tpu.vector_store %arg7[%c0_11, %c0_12], %12 {strides = array<i32>} : memref<8x128xf32, #tpu.memory_space<vmem>>, vector<8x128xf32>,
    } else {
    }
    %c0 = arith.constant 0 : index
    %c0_1 = arith.constant 0 : index
    %3 = vector.load %arg7[%c0, %c0_1] : memref<8x128xf32, #tpu.memory_space<vmem>>, vector<8x128xf32>
    %c0_2 = arith.constant 0 : index
    %c0_3 = arith.constant 0 : index
    %4 = vector.load %arg3[%c0_2, %c0_3] : memref<8x32xf32, #tpu.memory_space<vmem>>, vector<8x32xf32>
    %c0_4 = arith.constant 0 : index
    %c0_5 = arith.constant 0 : index
    %5 = vector.load %arg4[%c0_4, %c0_5] : memref<128x32xf32, #tpu.memory_space<vmem>>, vector<128x32xf32>
    %cst = arith.constant dense<0.000000e+00> : vector<8x128xf32>
    %6 = tpu.matmul %4, %5, %cst {dimension_numbers = #tpu.dot_dimension_numbers<[1], [1], [0], [0], [0, 0, 1, 0], [], []>} : vector<8x32xf32>, vector<128x32xf32>, vector<8x128xf32> -> vector<8x128xf32>
    %7 = arith.addf %3, %6 : vector<8x128xf32>
    %c0_6 = arith.constant 0 : index
    %c0_7 = arith.constant 0 : index
    %8 = vector.load %arg7[%c0_6, %c0_7] : memref<8x128xf32, #tpu.memory_space<vmem>>, vector<8x128xf32>
    tpu.vector_store %arg7[%c0_6, %c0_7], %7 {strides = array<i32>} : memref<8x128xf32, #tpu.memory_space<vmem>>, vector<8x128xf32>,
    %c0_i32_8 = arith.constant 0 : i32
    %9 = arith.cmpi eq, %arg2, %c0_i32_8 : i32
    %10 = arith.extui %9 : i1 to i32
    %c0_i32_9 = arith.constant 0 : i32
    %11 = arith.cmpi ne, %10, %c0_i32_9 : i32
    scf.if %11 {
      %c0_10 = arith.constant 0 : index
      %c0_11 = arith.constant 0 : index
      %12 = vector.load %arg7[%c0_10, %c0_11] : memref<8x128xf32, #tpu.memory_space<vmem>>, vector<8x128xf32>
      %c0_12 = arith.constant 0 : index
      %c0_13 = arith.constant 0 : index
      %13 = vector.load %arg5[%c0_12, %c0_13] : memref<1x128xf32, #tpu.memory_space<vmem>>, vector<1x128xf32>
      %14 = vector.broadcast %13 : vector<1x128xf32> to vector<8x128xf32>
      %15 = arith.addf %12, %14 : vector<8x128xf32>
      %c0_14 = arith.constant 0 : index
      %c0_15 = arith.constant 0 : index
      %16 = vector.load %arg6[%c0_14, %c0_15] : memref<8x128xf32, #tpu.memory_space<vmem>>, vector<8x128xf32>
      tpu.vector_store %arg6[%c0_14, %c0_15], %15 {strides = array<i32>} : memref<8x128xf32, #tpu.memory_space<vmem>>, vector<8x128xf32>,
    } else {
    }
    return
  }
  func.func @transform_0(%arg0: i32, %arg1: i32, %arg2: i32) -> (i32, i32) {
    %c0_i32 = arith.constant 0 : i32
    return %arg1, %arg2 : i32, i32
  }
  func.func @transform_1(%arg0: i32, %arg1: i32, %arg2: i32) -> (i32, i32) {
    %c0_i32 = arith.constant 0 : i32
    return %arg0, %arg2 : i32, i32
  }
  func.func @transform_2(%arg0: i32, %arg1: i32, %arg2: i32) -> (i32, i32) {
    %c0_i32 = arith.constant 0 : i32
    %c0_i32_0 = arith.constant 0 : i32
    return %c0_i32, %arg0 : i32, i32
  }
  func.func @transform_3(%arg0: i32, %arg1: i32, %arg2: i32) -> (i32, i32) {
    %c0_i32 = arith.constant 0 : i32
    return %arg1, %arg0 : i32, i32
  }
}

</mosaic_0001>

<bundles_post_ra>
// kernel: tpu_custom_call.1
= control target key start
LH: loop header
LB: loop body
LE: loop exit
PB: predicated region body
PF: predicated region fallthrough
CT: control target
= control target key end

     0   :  { %8 = vsyncpa [#allocation4], 0  ;;  %s416_s0 = inlined_call_operand.hbm [shape: f32[8,32], index: 0, kind: input, shape index: {}]   ;;  %s417_s1 = inlined_call_operand.hbm [shape: f32[8,32], index: 1, kind: input, shape index: {}]   ;;  %s418_s2 = inlined_call_operand.vmem [shape: f32[1,8], index: 2, kind: input, shape index: {}]   ;;  %s419_s3 = inlined_call_operand.hbm [shape: f32[8,8], index: 3, kind: output, shape index: {}]  }
   0x1   :  { %9 = vsyncpa [#allocation7], 0 }
   0x2   :  { %10 = vsyncpa [#allocation5], 0  ;;  %s360_s12 = smov [#allocation3]  }
   0x3   :  { %s17_s13 = sshll.u32 %s360_s12, 4  ;;  %s18_s13 = int_to_ptr.vmem [resolvable:$true] %s17_s13 }
   0x4   :  { %s302_s14 = scalar_lea.vmem %s18_s13, 128  ;;  %p307_p1 = scmp.lt.s32.totalorder %s18_s13, %s18_s13 }
   0x5   :  { %p303_p0 = scmp.ne.s32.totalorder %s18_s13, %s302_s14  ;;  %p308_p2 = scmp.lt.s32.totalorder %s302_s14, %s302_s14 }
   0x7   :  { %p309_p3 = por %p308_p2, %p307_p1 }
   0x9   :  { %p310_p4 = pnand %p309_p3, %p303_p0 }
   0xb   :  { %313 = shalt.err (!%p310_p4)
}
   0xc   :  { %20 = dma.hbm_to_vmem [thread:$0]  %s416_s0, 128, %s18_s13, [#allocation4]  }
   0xd   :  { %25 = vsyncadd [#allocation7], 1920  ;;  %s361_s17 = smov [#allocation6]  }
   0xe   :  { %s26_s18 = sshll.u32 %s361_s17, 4  ;;  %s27_s18 = int_to_ptr.vmem [resolvable:$true] %s26_s18 }
   0xf   :  { %s322_s19 = scalar_lea.vmem %s27_s18, 128  ;;  %s326_s20 = scalar_lea.vmem %s27_s18, 2048 }
  0x10   :  { %p323_p5 = scmp.ne.s32.totalorder %s27_s18, %s322_s19  ;;  %p327_p6 = scmp.lt.s32.totalorder %s27_s18, %s27_s18 }
  0x11   :  { %p328_p7 = scmp.lt.s32.totalorder %s326_s20, %s322_s19 }
  0x13   :  { %p329_p8 = por %p328_p7, %p327_p6 }
  0x15   :  { %p330_p9 = pnand %p329_p8, %p323_p5 }
  0x17   :  { %333 = shalt.err (!%p330_p9)
}
  0x18   :  { %s362_s21 = smov 128   ;;  %s363_s22 = smov 8  }
  0x19   :  { %32 = dma.hbm_to_vmem [thread:$0]  %s417_s1, 128, %s27_s18, [#allocation7], %s362_s21, %s362_s21, %s363_s22  }
  0x1a   :  { %354 = dma.done.wait [#allocation4], 128  }
  0x1b   :  { %355 = vsyncadd [#allocation4], 4294967168 }
  0x1c   :  { %356 = dma.done.wait [#allocation7], 2048  }
  0x1d   :  { %357 = vsyncadd [#allocation7], 4294965248  ;;  %v364_v0 = vmov 0.0   ;;  %vm365_vm0 = vmmov 0   ;;  %vm64_vm1 = vcmask 261120   ;;  %v63_v1 = vld [vmem:[#allocation6 + $0x78] sm:$0xff] }
  0x1e   :  { %252 = vmatprep.subr.mxu0 %v364_v0  ;;  %284 = vmatprep.mubr.msk.f32.mxu0 %vm365_vm0, %v364_v0  ;;  %v62_v2 = vld [vmem:[#allocation6 + $0x70] sm:$0xff]  ;;  %v61_v3 = vld [vmem:[#allocation6 + $0x68] sm:$0xff]  ;;  %v60_v4 = vld [vmem:[#allocation6 + $0x60] sm:$0xff]  ;;  %s366_s25 = smov [#allocation8]  }
  0x1f   :  { %253 = vmatpush3.xpose.msk.msra.mxu0 %vm64_vm1, %v63_v1  ;;  %v59_v5 = vld [vmem:[#allocation6 + $0x58] sm:$0xff]  ;;  %v58_v6 = vld [vmem:[#allocation6 + $0x50] sm:$0xff]  ;;  %v57_v7 = vld [vmem:[#allocation6 + $0x48] sm:$0xff]  ;;  %s207_s26 = sshll.u32 %s366_s25, 4  ;;  %s208_s26 = int_to_ptr.vmem [resolvable:$true] %s207_s26 }
  0x20   :  { %254 = vmatprep.subr.mxu0 %v364_v0  ;;  %v56_v8 = vld [vmem:[#allocation6 + $0x40] sm:$0xff]  ;;  %v55_v9 = vld [vmem:[#allocation6 + $0x38] sm:$0xff]  ;;  %v54_v10 = vld [vmem:[#allocation6 + $0x30] sm:$0xff]  ;;  %s334_s27 = scalar_lea.vmem %s208_s26, 128  ;;  %p339_p11 = scmp.lt.s32.totalorder %s208_s26, %s208_s26 }
  0x21   :  { %v53_v11 = vld [vmem:[#allocation6 + $0x28] sm:$0xff]  ;;  %v52_v12 = vld [vmem:[#allocation6 + $0x20] sm:$0xff]  ;;  %v51_v13 = vld [vmem:[#allocation6 + $0x18] sm:$0xff]  ;;  %p335_p10 = scmp.ne.s32.totalorder %s208_s26, %s334_s27  ;;  %p340_p12 = scmp.lt.s32.totalorder %s334_s27, %s334_s27 }
  0x22   :  { %v50_v14 = vld [vmem:[#allocation6 + $0x10] sm:$0xff]  ;;  %v49_v15 = vld [vmem:[#allocation6 + $0x8] sm:$0xff]  ;;  %v48_v16 = vld [vmem:[#allocation6] sm:$0xff] }
  0x23   :  { %255 = vmatpush3.xpose.msk.msra.mxu0 %vm64_vm1, %v62_v2  ;;  %v47_v17 = vld [vmem:[#allocation3] sm:$0xff]  ;;  %p341_p13 = por %p340_p12, %p339_p11 }
  0x24   :  { %256 = vmatprep.subr.mxu0 %v364_v0  ;;  %v234_v18 = vld [vmem:[%s418_s2] ss:$0 sm:$0xff] }
  0x25   :  { %p342_p0 = pnand %p341_p13, %p335_p10 }
  0x27   :  { %257 = vmatpush3.xpose.msk.msra.mxu0 %vm64_vm1, %v61_v3 }
  0x28   :  { %258 = vmatprep.subr.mxu0 %v364_v0 }
  0x2b   :  { %259 = vmatpush3.xpose.msk.msra.mxu0 %vm64_vm1, %v60_v4 }
  0x2c   :  { %260 = vmatprep.subr.mxu0 %v364_v0 }
  0x2f   :  { %261 = vmatpush3.xpose.msk.msra.mxu0 %vm64_vm1, %v59_v5 }
  0x30   :  { %262 = vmatprep.subr.mxu0 %v364_v0 }
  0x33   :  { %263 = vmatpush3.xpose.msk.msra.mxu0 %vm64_vm1, %v58_v6 }
  0x34   :  { %264 = vmatprep.subr.mxu0 %v364_v0 }
  0x37   :  { %265 = vmatpush3.xpose.msk.msra.mxu0 %vm64_vm1, %v57_v7 }
  0x38   :  { %266 = vmatprep.subr.mxu0 %v364_v0 }
  0x3b   :  { %267 = vmatpush3.xpose.msk.msra.mxu0 %vm64_vm1, %v56_v8 }
  0x3c   :  { %268 = vmatprep.subr.mxu0 %v364_v0 }
  0x3f   :  { %269 = vmatpush3.xpose.msk.msra.mxu0 %vm64_vm1, %v55_v9 }
  0x40   :  { %270 = vmatprep.subr.mxu0 %v364_v0 }
  0x43   :  { %271 = vmatpush3.xpose.msk.msra.mxu0 %vm64_vm1, %v54_v10 }
  0x44   :  { %272 = vmatprep.subr.mxu0 %v364_v0 }
  0x47   :  { %273 = vmatpush3.xpose.msk.msra.mxu0 %vm64_vm1, %v53_v11 }
  0x48   :  { %274 = vmatprep.subr.mxu0 %v364_v0 }
  0x4b   :  { %275 = vmatpush3.xpose.msk.msra.mxu0 %vm64_vm1, %v52_v12 }
  0x4c   :  { %276 = vmatprep.subr.mxu0 %v364_v0 }
  0x4f   :  { %277 = vmatpush3.xpose.msk.msra.mxu0 %vm64_vm1, %v51_v13 }
  0x50   :  { %278 = vmatprep.subr.mxu0 %v364_v0 }
  0x53   :  { %279 = vmatpush3.xpose.msk.msra.mxu0 %vm64_vm1, %v50_v14 }
  0x54   :  { %280 = vmatprep.subr.mxu0 %v364_v0 }
  0x57   :  { %281 = vmatpush3.xpose.msk.msra.mxu0 %vm64_vm1, %v49_v15 }
  0x58   :  { %282 = vmatprep.subr.mxu0 %v364_v0 }
  0x5b   :  { %283 = vmatpush3.xpose.msk.msra.mxu0 %vm64_vm1, %v48_v16 }
  0x5e   :  { %285 = vmatmul.mubr.msk.f32.vlgmr.msra.gmra.mxu0 %vm64_vm1, %v47_v17 }
 0x11e   :  { %v182_v19 = vpop.f32.mrf.mxu0 }
 0x11f   :  { %v199_v20 = vadd.f32 %v234_v18, %v182_v19 }
 0x120   :  { %v286_v21 = vpop.f32.mrf.mxu0 }
 0x121   :  { %200 = vst [vmem:[#allocation8] sm:$0xff] %v199_v20 }
 0x122   :  { %345 = shalt.err (!%p342_p0)
}
 0x123   :  { %210 = dma.vmem_to_hbm [thread:$0]  %s208_s26, 128, %s419_s3, [#allocation5]  }
 0x124   :  { %358 = dma.done.wait [#allocation5], 128  }
 0x125   :  { %359 = vsyncadd [#allocation5], 4294967168 }
 0x126   :  { %214 = vsyncpa [#allocation4], 1 }
 0x127   :  { %215 = vsyncpa [#allocation7], 1 }
 0x128   :  { %216 = vsyncpa [#allocation5], 1 }

</bundles_post_ra>
